<compile_context>
chip_gen: v7x
topology: tpu7x:2x2x1
jax: 0.10.0
libtpu: 0.0.40
codegen_flags: <defaults>
</compile_context>

<pallas_src>
import jax
import jax.numpy as jnp
from jax.experimental import pallas as pl
from jax.experimental.pallas import tpu as pltpu

_LANES = 128        # vreg lane width (last dim kept lane-dense)
_SUBLANES = 8       # f32 sublane count -> minimum (8, 128) block
_MAX_TILE_ROWS = 4096   # 4096 * 128 * 4B = 2 MiB per f32 tile


def _linear_kernel(wb_ref, x_ref, o_ref):
    # wb_ref: (2,) SMEM -> [weight, bias] scalars.
    # x_ref / o_ref: (tile_rows, 128) lane-dense VMEM tiles.
    w = wb_ref[0]
    b = wb_ref[1]
    # Single elementwise FMA on the VPU, stored straight to the output tile.
    o_ref[...] = x_ref[...] * w + b


def linear_regression_forward(x, weight, bias):
    """y = x @ weight.T + bias with weight (1,1), bias (1,), x (N,1) float32."""
    batch, in_f = x.shape
    assert in_f == 1 and weight.shape == (1, 1) and bias.shape == (1,)
    assert x.dtype == jnp.float32  # bf16 would need a (16, 128) minimum block

    n = batch
    rows = pl.cdiv(n, _LANES)          # 128-wide rows needed for a lane-dense slab
    padded = rows * _LANES

    x_flat = x.reshape(-1)
    if padded != n:
        # Minimal pad (to the next 128 multiple only). Batches that are already
        # a multiple of 128 take the zero-copy path: no pad, no output slice.
        x_flat = jnp.pad(x_flat, (0, padded - n))
    x2d = x_flat.reshape(rows, _LANES)

    # Choose tile_rows:
    #   * large inputs  -> big (<=2 MiB) tiles, but always >= 2 grid steps so
    #     the "parallel" axis can be split across v7x's two TensorCores;
    #   * tiny inputs   -> a single full-extent block (allowed by Pallas).
    if rows >= 2 * _SUBLANES:
        half = pl.cdiv(rows, 2)
        half = pl.cdiv(half, _SUBLANES) * _SUBLANES      # round up to sublane multiple
        tile_rows = min(_MAX_TILE_ROWS, half)
    elif rows >= _SUBLANES:
        tile_rows = _SUBLANES
    else:
        tile_rows = rows                                 # full-extent block

    grid = (pl.cdiv(rows, tile_rows),)                   # edge block masked by Pallas

    # Pack weight + bias into one tiny SMEM array (2 scalars).
    wb = jnp.concatenate([weight.reshape(-1), bias.reshape(-1)]).astype(x.dtype)

    out2d = pl.pallas_call(
        _linear_kernel,
        out_shape=jax.ShapeDtypeStruct((rows, _LANES), x.dtype),
        grid_spec=pl.GridSpec(
            grid=grid,
            in_specs=[
                pl.BlockSpec(memory_space=pltpu.MemorySpace.SMEM),    # packed w, b
                pl.BlockSpec((tile_rows, _LANES), lambda i: (i, 0)),  # x tiles
            ],
            out_specs=pl.BlockSpec((tile_rows, _LANES), lambda i: (i, 0)),
        ),
        compiler_params=pltpu.CompilerParams(
            # Batch axis is embarrassingly parallel -> shard across both
            # TensorCores on v7x; harmless on single-TC v5e/v6e.
            dimension_semantics=("parallel",),
            # Double-buffered in+out at 2 MiB tiles is 8 MiB; 32 MiB scoped
            # leaves headroom yet stays safe on v7x's 64 MiB physical VMEM.
            vmem_limit_bytes=32 * 1024 * 1024,
        ),
    )(wb, x2d)

    if padded != n:
        # Padded tail rows contain w*garbage + b; sliced off here.
        return out2d.reshape(-1)[:n].reshape(batch, 1)
    return out2d.reshape(batch, 1)


if __name__ == "__main__":
    key = jax.random.PRNGKey(0)
    kx, kw, kb, kx2 = jax.random.split(key, 4)

    # Deterministic parameter init mimicking nn.Linear(1, 1):
    # uniform(-1/sqrt(in_features), 1/sqrt(in_features)) = uniform(-1, 1)
    weight = jax.random.uniform(kw, (1, 1), dtype=jnp.float32, minval=-1.0, maxval=1.0)
    bias = jax.random.uniform(kb, (1,), dtype=jnp.float32, minval=-1.0, maxval=1.0)

    ok = True

    # Case 1: tiny batch (matches the PyTorch module's typical toy usage).
    batch = 8
    x = jax.random.normal(kx, (batch, 1), dtype=jnp.float32)
    y = jax.block_until_ready(linear_regression_forward(x, weight, bias))
    y_ref = x @ weight.T + bias
    ok &= (y.shape == (batch, 1)) and bool(jnp.allclose(y, y_ref, atol=1e-6))

    # Case 2: batch that is a multiple of 128 but NOT of the row tile
    # (exercises the no-pad path, a 2-step grid, and Pallas edge-block masking).
    batch2 = 17 * 128
    x2 = jax.random.normal(kx2, (batch2, 1), dtype=jnp.float32)
    y2 = jax.block_until_ready(linear_regression_forward(x2, weight, bias))
    y2_ref = x2 @ weight.T + bias
    ok &= (y2.shape == (batch2, 1)) and bool(jnp.allclose(y2, y2_ref, atol=1e-6))

    assert ok
    print("KERNEL_OK")
</pallas_src>

<mosaic_0001>
module attributes {stable_mosaic.version = 11 : i64} {
  func.func @_linear_kernel(%arg0: i32, %arg1: memref<2xf32, #tpu.memory_space<smem>>, %arg2: memref<1x128xf32, #tpu.memory_space<vmem>>, %arg3: memref<1x128xf32, #tpu.memory_space<vmem>>) attributes {dimension_semantics = [#tpu.dimension_semantics<parallel>], iteration_bounds = array<i64: 1>, scalar_prefetch = 0 : i64, scratch_operands = 0 : i64, tpu.core_type = #tpu.core_type<tc>, window_params = [{transform_indices = @transform_0, window_bounds = array<i64: 2>}, {transform_indices = @transform_1, window_bounds = array<i64: 1, 128>}, {transform_indices = @transform_2, window_bounds = array<i64: 1, 128>}]} {
    %c0 = arith.constant 0 : index
    %0 = memref.load %arg1[%c0] : memref<2xf32, #tpu.memory_space<smem>>
    %c1 = arith.constant 1 : index
    %1 = memref.load %arg1[%c1] : memref<2xf32, #tpu.memory_space<smem>>
    %c0_0 = arith.constant 0 : index
    %c0_1 = arith.constant 0 : index
    %2 = vector.load %arg2[%c0_0, %c0_1] : memref<1x128xf32, #tpu.memory_space<vmem>>, vector<1x128xf32>
    %3 = vector.broadcast %0 : f32 to vector<1x128xf32>
    %4 = arith.mulf %2, %3 : vector<1x128xf32>
    %5 = vector.broadcast %1 : f32 to vector<1x128xf32>
    %6 = arith.addf %4, %5 : vector<1x128xf32>
    %c0_2 = arith.constant 0 : index
    %c0_3 = arith.constant 0 : index
    %7 = vector.load %arg3[%c0_2, %c0_3] : memref<1x128xf32, #tpu.memory_space<vmem>>, vector<1x128xf32>
    tpu.vector_store %arg3[%c0_2, %c0_3], %6 {strides = array<i32>} : memref<1x128xf32, #tpu.memory_space<vmem>>, vector<1x128xf32>,
    return
  }
  func.func @transform_0(%arg0: i32) -> i32 {
    %c0_i32 = arith.constant 0 : i32
    %c0_i32_0 = arith.constant 0 : i32
    return %c0_i32 : i32
  }
  func.func @transform_1(%arg0: i32) -> (i32, i32) {
    %c0_i32 = arith.constant 0 : i32
    %c0_i32_0 = arith.constant 0 : i32
    return %arg0, %c0_i32 : i32, i32
  }
  func.func @transform_2(%arg0: i32) -> (i32, i32) {
    %c0_i32 = arith.constant 0 : i32
    %c0_i32_0 = arith.constant 0 : i32
    return %arg0, %c0_i32 : i32, i32
  }
}

</mosaic_0001>

<bundles_post_ra>
// kernel: tpu_custom_call.1
= control target key start
LH: loop header
LB: loop body
LE: loop exit
PB: predicated region body
PF: predicated region fallthrough
CT: control target
= control target key end

     0   :  { %7 = vsyncpa [#allocation4], 0  ;;  %s129_s0 = inlined_call_operand.hbm [shape: f32[2], index: 0, kind: input, shape index: {}]   ;;  %s130_s1 = inlined_call_operand.vmem [shape: f32[1,128], index: 1, kind: input, shape index: {}]   ;;  %s131_s2 = inlined_call_operand.hbm [shape: f32[1,128], index: 2, kind: output, shape index: {}]  }
   0x1   :  { %8 = vsyncpa [#allocation3], 0  ;;  %s49_s11 = scalar_lea.hbm %s129_s0, 16 }
   0x2   :  { %p50_p0 = scmp.ne.s32.totalorder %s129_s0, %s49_s11  ;;  %p53_p1 = scmp.lt.u32.totalorder %s49_s11, %s129_s0 }
   0x4   :  { %p55_p2 = pnand %p53_p1, %p50_p0 }
   0x6   :  { %58 = shalt.err (!%p55_p2)
}
   0x7   :  { %s85_s16 = smov [#allocation2]  }
   0x8   :  { %16 = dma.hbm_to_smem %s129_s0, 16, %s85_s16, [#allocation4]  }
   0x9   :  { %81 = dma.done.wait [#allocation4], 16  }
   0xa   :  { %82 = vsyncadd [#allocation4], 4294967280 }
   0xb   :  { %22 = sfence }
   0xc   :  { %s23_s19 = sld [smem:[#allocation2]]  ;;  %s46_s20 = sld [smem:[#allocation2 + $0x1]]  ;;  %v25_v0 = vld [vmem:[%s130_s1] sm:$0x1] }
   0xd   :  { %s86_s23 = smov [#allocation5]  }
   0xe   :  { %s37_s24 = sshll.u32 %s86_s23, 4  ;;  %s38_s24 = int_to_ptr.vmem [resolvable:$true] %s37_s24 }
   0xf   :  { %s59_s25 = scalar_lea.vmem %s38_s24, 16  ;;  %s63_s0 = scalar_lea.vmem %s38_s24, 32 }
  0x10   :  { %p60_p3 = scmp.ne.s32.totalorder %s38_s24, %s59_s25  ;;  %p64_p4 = scmp.lt.s32.totalorder %s38_s24, %s38_s24 }
  0x11   :  { %p65_p5 = scmp.lt.s32.totalorder %s63_s0, %s59_s25 }
  0x12   :  { %v26_v1 = vstv %s23_s19  ;;  %v28_v2 = vstv %s46_s20 }
  0x13   :  { %v27_v3 = vmul.f32 %v26_v1, %v25_v0  ;;  %p66_p6 = por %p65_p5, %p64_p4 }
  0x15   :  { %v29_v4 = vadd.f32 %v28_v2, %v27_v3  ;;  %p67_p7 = pnand %p66_p6, %p60_p3 }
  0x17   :  { %30 = vst [vmem:[#allocation5] sm:$0x1] %v29_v4 }
  0x18   :  { %70 = shalt.err (!%p67_p7)
}
  0x19   :  { %s71_s1 = scalar_lea.hbm %s131_s2, 16 }
  0x1a   :  { %p72_p8 = scmp.ne.s32.totalorder %s131_s2, %s71_s1  ;;  %p75_p9 = scmp.lt.u32.totalorder %s71_s1, %s131_s2 }
  0x1c   :  { %p77_p10 = pnand %p75_p9, %p72_p8 }
  0x1e   :  { %80 = shalt.err (!%p77_p10)
}
  0x1f   :  { %40 = dma.vmem_to_hbm [thread:$0]  %s38_s24, 16, %s131_s2, [#allocation3]  }
  0x20   :  { %83 = dma.done.wait [#allocation3], 16  }
  0x21   :  { %84 = vsyncadd [#allocation3], 4294967280 }
  0x22   :  { %44 = vsyncpa [#allocation3], 1 }
  0x23   :  { %45 = vsyncpa [#allocation4], 1 }

</bundles_post_ra>
